<compile_context>
chip_gen: v5e
topology: v5e:2x2
jax: 0.10.0
libtpu: 0.0.40
codegen_flags: <defaults>
</compile_context>

<pallas_src>
import functools

import jax
import jax.numpy as jnp
from jax.experimental import pallas as pl
from jax.experimental.pallas import tpu as pltpu


def _round_up(x, m):
    return (x + m - 1) // m * m


def _cdiv(a, b):
    return -(-a // b)


# ---------------------------------------------------------------------------
# Kernel body.
# ---------------------------------------------------------------------------
def _ffn_glu_kernel(x_ref, w1_ref, w3_ref, w2_ref, o_ref, acc_ref):
    # x_ref:   (tm, D)     activations (native dtype, no up-cast)
    # w1_ref:  (D, th)     up-projection tile j
    # w3_ref:  (D, th)     gate-projection tile j
    # w2_ref:  (th, D)     down-projection tile j
    # o_ref:   (tm, D)     revisited across the hidden (j) axis
    # acc_ref: (tm, D) f32 VMEM accumulator
    j = pl.program_id(1)

    @pl.when(j == 0)
    def _():
        acc_ref[...] = jnp.zeros_like(acc_ref)

    x = x_ref[...]
    h1 = jnp.dot(x, w1_ref[...], preferred_element_type=jnp.float32)
    h3 = jnp.dot(x, w3_ref[...], preferred_element_type=jnp.float32)
    gated = (h1 * jax.nn.sigmoid(h1)) * h3            # SiLU gate in f32
    # Down-projection: cast gate back to weight dtype (bf16 path stays bf16).
    acc_ref[...] += jnp.dot(gated.astype(w2_ref.dtype), w2_ref[...],
                            preferred_element_type=jnp.float32)

    @pl.when(j == pl.num_programs(1) - 1)
    def _():
        o_ref[...] = acc_ref[...].astype(o_ref.dtype)


# ---------------------------------------------------------------------------
# Generation-aware tile / VMEM selection (plain Python, runs outside jit).
# ---------------------------------------------------------------------------
def _select_tiles(M, D, H, x_item, w_item, tm_user, th_user):
    try:
        vmem_phys = int(pltpu.get_tpu_info().vmem_capacity_bytes)
    except Exception:
        vmem_phys = 64 << 20                     # conservative fallback (v7x)
    big_vmem = vmem_phys >= (96 << 20)           # v5e / v6e: 128 MiB per TC
    # Leave headroom for Mosaic internal scratch & compiler temporaries.
    budget = min(vmem_phys - (20 << 20), 108 << 20) if big_vmem else (52 << 20)

    M_r = _round_up(M, 16)
    H_r = _round_up(H, 128)

    # tm is the weight-reuse knob: per grid step FLOPs/weight-byte ~ tm, so
    # ~512 rows clears the v6e/v7x compute roofline; extra VMEM is cheap on v5e.
    tm = tm_user if tm_user is not None else min(512, M_r)
    tm = min(max(16, _round_up(tm, 16)), M_r)

    # Small-VMEM chips (v7x) have 2 TensorCores: make sure the "parallel"
    # i axis has >= 2 blocks so both cores get work.
    if (not big_vmem) and tm_user is None and M_r > 16 and _cdiv(M_r, tm) < 2:
        tm = max(16, _round_up(_cdiv(M_r, 2), 16))

    # th only trades VMEM vs. per-step overhead: shrink it before tm.
    th = th_user if th_user is not None else min(1024 if big_vmem else 512, H_r)
    th = min(max(128, _round_up(th, 128)), H_r)

    def vmem_est(tm_, th_):
        return (2 * tm_ * D * x_item             # x tile (double-buffered)
                + 2 * 2 * D * th_ * w_item       # w1 + w3 tiles
                + 2 * th_ * D * w_item           # w2 tile
                + 2 * tm_ * D * x_item           # output tile
                + tm_ * D * 4                    # f32 accumulator scratch
                + 3 * tm_ * th_ * 4              # h1 / h3 / gated f32 temps
                + tm_ * th_ * w_item)            # gated cast copy

    if th_user is None:
        while th > 128 and vmem_est(tm, th) > budget:
            th = max(128, _round_up(th // 2, 128))
    if tm_user is None:
        while tm > 16 and vmem_est(tm, th) > budget:
            tm = max(16, _round_up(tm // 2, 16))

    est = vmem_est(tm, th)
    vmem_limit = int(min(budget, max(int(1.25 * est) + (2 << 20), 32 << 20)))
    return tm, th, vmem_limit


# ---------------------------------------------------------------------------
# Jitted wrapper around pallas_call (tile sizes are static args).
# ---------------------------------------------------------------------------
@functools.partial(jax.jit, static_argnames=("tm", "th", "vmem_limit"))
def _ffn_glu_call(x_BLD, w1_DH, w3_DH, w2_HD, *, tm, th, vmem_limit):
    B, L, D = x_BLD.shape
    H = w1_DH.shape[1]
    M = B * L
    x_dtype = x_BLD.dtype
    x_item = jnp.dtype(x_dtype).itemsize
    w_item = jnp.dtype(w1_DH.dtype).itemsize

    M_pad = _round_up(M, tm)
    H_pad = _round_up(H, th)
    n_i = M_pad // tm
    n_h = H_pad // th

    x_MD = x_BLD.reshape(M, D)
    if M_pad != M:
        # TODO(synk): replace with a masked final row tile to avoid this copy.
        x_MD = jnp.pad(x_MD, ((0, M_pad - M), (0, 0)))
    if H_pad != H:
        # Zero-padded hidden units contribute exactly zero.
        # TODO(synk): pre-pad weights once at weight-load time in a real model.
        w1_DH = jnp.pad(w1_DH, ((0, 0), (0, H_pad - H)))
        w3_DH = jnp.pad(w3_DH, ((0, 0), (0, H_pad - H)))
        w2_HD = jnp.pad(w2_HD, ((0, H_pad - H), (0, 0)))

    cost = pl.CostEstimate(
        flops=6 * M * D * H,                      # 2*M*D*H per matmul, x3
        transcendentals=M * H,                    # sigmoid
        bytes_accessed=(2 * M_pad * D * x_item    # x read + output write
                        + n_i * 3 * D * H_pad * w_item),  # weights re-streamed per row tile
    )

    # TODO(synk): if profiling shows the w1/w3 DMAs exposed on v5e/v6e, add
    # pipeline_mode=pl.Buffered(3) to those in_specs (VMEM headroom permitting).
    out_MD = pl.pallas_call(
        _ffn_glu_kernel,
        out_shape=jax.ShapeDtypeStruct((M_pad, D), x_dtype),
        grid_spec=pltpu.PrefetchScalarGridSpec(
            num_scalar_prefetch=0,
            grid=(n_i, n_h),
            in_specs=[
                pl.BlockSpec((tm, D), lambda i, j: (i, 0)),   # x row tile
                pl.BlockSpec((D, th), lambda i, j: (0, j)),   # W1 tile
                pl.BlockSpec((D, th), lambda i, j: (0, j)),   # W3 tile
                pl.BlockSpec((th, D), lambda i, j: (j, 0)),   # W2 tile
            ],
            out_specs=pl.BlockSpec((tm, D), lambda i, j: (i, 0)),
            scratch_shapes=[pltpu.VMEM((tm, D), jnp.float32)],
        ),
        compiler_params=pltpu.CompilerParams(
            dimension_semantics=("parallel", "arbitrary"),
            vmem_limit_bytes=vmem_limit,
        ),
        cost_estimate=cost,
    )(x_MD, w1_DH, w3_DH, w2_HD)

    if M_pad != M:
        out_MD = out_MD[:M]
    return out_MD.reshape(B, L, D)


def feed_forward_glu(x_BLD, w1_DH, w3_DH, w2_HD, *, tm=None, th=None):
    """x_BLD: (B, L, D); w1/w3: (D, H); w2: (H, D) (transposed vs torch Linear)."""
    B, L, D = x_BLD.shape
    H = w1_DH.shape[1]
    M = B * L
    tm, th, vmem_limit = _select_tiles(
        M, D, H,
        jnp.dtype(x_BLD.dtype).itemsize,
        jnp.dtype(w1_DH.dtype).itemsize,
        tm, th)
    return _ffn_glu_call(x_BLD, w1_DH, w3_DH, w2_HD,
                         tm=tm, th=th, vmem_limit=vmem_limit)


def _reference(x_BLD, w1_DH, w3_DH, w2_HD):
    h1 = jnp.einsum("bld,dh->blh", x_BLD, w1_DH)
    h3 = jnp.einsum("bld,dh->blh", x_BLD, w3_DH)
    g = (h1 * jax.nn.sigmoid(h1)) * h3
    return jnp.einsum("blh,hd->bld", g, w2_HD)


if __name__ == "__main__":
    B, L, D = 2, 8, 32
    H = D * 4  # hidden_dim defaults to dim * 4

    key = jax.random.PRNGKey(0)
    kx, k1, k2, k3 = jax.random.split(key, 4)

    x = jax.random.normal(kx, (B, L, D), dtype=jnp.float32)
    # PyTorch nn.Linear stores weight as (out, in); we keep the transposed
    # (in, out) layout so the kernel computes x @ W (== x @ weight.T in torch).
    w1 = jax.random.normal(k1, (D, H), dtype=jnp.float32) * 0.05
    w3 = jax.random.normal(k3, (D, H), dtype=jnp.float32) * 0.05
    w2 = jax.random.normal(k2, (H, D), dtype=jnp.float32) * 0.05

    out = feed_forward_glu(x, w1, w3, w2)
    out = jax.block_until_ready(out)

    ref = _reference(x, w1, w3, w2)
    assert out.shape == (B, L, D)
    assert jnp.allclose(out, ref, atol=1e-4, rtol=1e-4)

    print("KERNEL_OK")
</pallas_src>

<mosaic_0001>
module attributes {stable_mosaic.version = 11 : i64} {
  func.func @_ffn_glu_kernel(%arg0: i32, %arg1: i32, %arg2: memref<16x32xf32, #tpu.memory_space<vmem>>, %arg3: memref<32x128xf32, #tpu.memory_space<vmem>>, %arg4: memref<32x128xf32, #tpu.memory_space<vmem>>, %arg5: memref<128x32xf32, #tpu.memory_space<vmem>>, %arg6: memref<16x32xf32, #tpu.memory_space<vmem>>, %arg7: memref<16x32xf32, #tpu.memory_space<vmem>>) attributes {dimension_semantics = [#tpu.dimension_semantics<parallel>, #tpu.dimension_semantics<arbitrary>], iteration_bounds = array<i64: 1, 1>, scalar_prefetch = 0 : i64, scratch_operands = 1 : i64, tpu.core_type = #tpu.core_type<tc>, window_params = [{transform_indices = @transform_0, window_bounds = array<i64: 16, 32>}, {transform_indices = @transform_1, window_bounds = array<i64: 32, 128>}, {transform_indices = @transform_2, window_bounds = array<i64: 32, 128>}, {transform_indices = @transform_3, window_bounds = array<i64: 128, 32>}, {transform_indices = @transform_4, window_bounds = array<i64: 16, 32>}]} {
    %c0_i32 = arith.constant 0 : i32
    %0 = arith.cmpi eq, %arg1, %c0_i32 : i32
    %1 = arith.extui %0 : i1 to i32
    %c0_i32_0 = arith.constant 0 : i32
    %2 = arith.cmpi ne, %1, %c0_i32_0 : i32
    scf.if %2 {
      %cst_17 = arith.constant 0.000000e+00 : f32
      %23 = vector.broadcast %cst_17 : f32 to vector<16x32xf32>
      %c0_18 = arith.constant 0 : index
      %c0_19 = arith.constant 0 : index
      %24 = vector.load %arg7[%c0_18, %c0_19] : memref<16x32xf32, #tpu.memory_space<vmem>>, vector<16x32xf32>
      tpu.vector_store %arg7[%c0_18, %c0_19], %23 {strides = array<i32>} : memref<16x32xf32, #tpu.memory_space<vmem>>, vector<16x32xf32>,
    } else {
    }
    %c0 = arith.constant 0 : index
    %c0_1 = arith.constant 0 : index
    %3 = vector.load %arg2[%c0, %c0_1] : memref<16x32xf32, #tpu.memory_space<vmem>>, vector<16x32xf32>
    %c0_2 = arith.constant 0 : index
    %c0_3 = arith.constant 0 : index
    %4 = vector.load %arg3[%c0_2, %c0_3] : memref<32x128xf32, #tpu.memory_space<vmem>>, vector<32x128xf32>
    %cst = arith.constant dense<0.000000e+00> : vector<16x128xf32>
    %5 = tpu.matmul %3, %4, %cst {dimension_numbers = #tpu.dot_dimension_numbers<[1], [0], [0], [1], [0, 0, 1, 1], [], []>} : vector<16x32xf32>, vector<32x128xf32>, vector<16x128xf32> -> vector<16x128xf32>
    %c0_4 = arith.constant 0 : index
    %c0_5 = arith.constant 0 : index
    %6 = vector.load %arg4[%c0_4, %c0_5] : memref<32x128xf32, #tpu.memory_space<vmem>>, vector<32x128xf32>
    %cst_6 = arith.constant dense<0.000000e+00> : vector<16x128xf32>
    %7 = tpu.matmul %3, %6, %cst_6 {dimension_numbers = #tpu.dot_dimension_numbers<[1], [0], [0], [1], [0, 0, 1, 1], [], []>} : vector<16x32xf32>, vector<32x128xf32>, vector<16x128xf32> -> vector<16x128xf32>
    %8 = arith.negf %5 : vector<16x128xf32>
    %9 = math.exp %8 : vector<16x128xf32>
    %cst_7 = arith.constant 1.000000e+00 : f32
    %10 = vector.broadcast %cst_7 : f32 to vector<16x128xf32>
    %11 = arith.addf %10, %9 : vector<16x128xf32>
    %12 = arith.divf %10, %11 : vector<16x128xf32>
    %13 = arith.mulf %5, %12 : vector<16x128xf32>
    %14 = arith.mulf %13, %7 : vector<16x128xf32>
    %c0_8 = arith.constant 0 : index
    %c0_9 = arith.constant 0 : index
    %15 = vector.load %arg7[%c0_8, %c0_9] : memref<16x32xf32, #tpu.memory_space<vmem>>, vector<16x32xf32>
    %c0_10 = arith.constant 0 : index
    %c0_11 = arith.constant 0 : index
    %16 = vector.load %arg5[%c0_10, %c0_11] : memref<128x32xf32, #tpu.memory_space<vmem>>, vector<128x32xf32>
    %cst_12 = arith.constant dense<0.000000e+00> : vector<16x32xf32>
    %17 = tpu.matmul %14, %16, %cst_12 {dimension_numbers = #tpu.dot_dimension_numbers<[1], [0], [0], [1], [0, 0, 1, 1], [], []>} : vector<16x128xf32>, vector<128x32xf32>, vector<16x32xf32> -> vector<16x32xf32>
    %18 = arith.addf %15, %17 : vector<16x32xf32>
    %c0_13 = arith.constant 0 : index
    %c0_14 = arith.constant 0 : index
    %19 = vector.load %arg7[%c0_13, %c0_14] : memref<16x32xf32, #tpu.memory_space<vmem>>, vector<16x32xf32>
    tpu.vector_store %arg7[%c0_13, %c0_14], %18 {strides = array<i32>} : memref<16x32xf32, #tpu.memory_space<vmem>>, vector<16x32xf32>,
    %c0_i32_15 = arith.constant 0 : i32
    %20 = arith.cmpi eq, %arg1, %c0_i32_15 : i32
    %21 = arith.extui %20 : i1 to i32
    %c0_i32_16 = arith.constant 0 : i32
    %22 = arith.cmpi ne, %21, %c0_i32_16 : i32
    scf.if %22 {
      %c0_17 = arith.constant 0 : index
      %c0_18 = arith.constant 0 : index
      %23 = vector.load %arg7[%c0_17, %c0_18] : memref<16x32xf32, #tpu.memory_space<vmem>>, vector<16x32xf32>
      %c0_19 = arith.constant 0 : index
      %c0_20 = arith.constant 0 : index
      %24 = vector.load %arg6[%c0_19, %c0_20] : memref<16x32xf32, #tpu.memory_space<vmem>>, vector<16x32xf32>
      tpu.vector_store %arg6[%c0_19, %c0_20], %23 {strides = array<i32>} : memref<16x32xf32, #tpu.memory_space<vmem>>, vector<16x32xf32>,
    } else {
    }
    return
  }
  func.func @transform_0(%arg0: i32, %arg1: i32) -> (i32, i32) {
    %c0_i32 = arith.constant 0 : i32
    %c0_i32_0 = arith.constant 0 : i32
    return %arg0, %c0_i32 : i32, i32
  }
  func.func @transform_1(%arg0: i32, %arg1: i32) -> (i32, i32) {
    %c0_i32 = arith.constant 0 : i32
    %c0_i32_0 = arith.constant 0 : i32
    return %c0_i32, %arg1 : i32, i32
  }
  func.func @transform_2(%arg0: i32, %arg1: i32) -> (i32, i32) {
    %c0_i32 = arith.constant 0 : i32
    %c0_i32_0 = arith.constant 0 : i32
    return %c0_i32, %arg1 : i32, i32
  }
  func.func @transform_3(%arg0: i32, %arg1: i32) -> (i32, i32) {
    %c0_i32 = arith.constant 0 : i32
    %c0_i32_0 = arith.constant 0 : i32
    return %arg1, %c0_i32 : i32, i32
  }
  func.func @transform_4(%arg0: i32, %arg1: i32) -> (i32, i32) {
    %c0_i32 = arith.constant 0 : i32
    %c0_i32_0 = arith.constant 0 : i32
    return %arg0, %c0_i32 : i32, i32
  }
}

</mosaic_0001>

<bundles_post_ra>
// kernel: _ffn_glu_call.1
= control target key start
LH: loop header
LB: loop body
LE: loop exit
PB: predicated region body
PF: predicated region fallthrough
CT: control target
= control target key end

     0   :  { %s380_s0 = inlined_call_operand.vmem [shape: f32[16,32], index: 0, kind: input, shape index: {}]   ;;  %s381_s1 = inlined_call_operand.vmem [shape: f32[32,128], index: 1, kind: input, shape index: {}]   ;;  %s382_s2 = inlined_call_operand.vmem [shape: f32[32,128], index: 2, kind: input, shape index: {}]   ;;  %s383_s3 = inlined_call_operand.vmem [shape: f32[128,32], index: 3, kind: input, shape index: {}]   ;;  %s384_s4 = inlined_call_operand.hbm [shape: f32[16,32], index: 4, kind: output, shape index: {}]  }
   0x1   :  { %v30_v0 = vld [vmem:[%s381_s1 + $0x18] sm:$0xff]  ;;  %v29_v1 = vld [vmem:[%s381_s1 + $0x10] sm:$0xff]  ;;  %v28_v2 = vld [vmem:[%s381_s1 + $0x8] sm:$0xff] }
   0x2   :  { %50 = vmatpush.msra.mxu0 %v30_v0  ;;  %v64_v3 = vld [vmem:[%s382_s2 + $0x18] sm:$0xff]  ;;  %v63_v4 = vld [vmem:[%s382_s2 + $0x10] sm:$0xff] }
   0x3   :  { %77 = vmatpush.msra.mxu1 %v64_v3 }
   0x4   :  { %51 = vmatpush.msra.mxu0 %v29_v1 }
   0x5   :  { %9 = vsyncpa [#allocation4], 0  ;;  %v27_v5 = vld [vmem:[%s381_s1] sm:$0xff]  ;;  %v62_v6 = vld [vmem:[%s382_s2 + $0x8] sm:$0xff]  ;;  %vm22_vm0 = vcmask 261120   ;;  %78 = vmatpush.msra.mxu1 %v63_v4  ;;  %v260_v32 = vmov 0.0  }
   0x6   :  { %52 = vmatpush.msra.mxu0 %v28_v2  ;;  %v25_v7 = vld [vmem:[%s380_s0] sm:$0xff]  ;;  %v26_v9 = vld [vmem:[%s380_s0 + $0x8] sm:$0xff]  ;;  %v147_v10 = vld [vmem:[%s383_s3 + $0x78] sm:$0xff]  ;;  %23 = vst.msk [vmem:[#allocation2] sm:$0xff] %vm22_vm0, %v260_v32  ;;  %s188_s0 = sshll.u32 %s384_s4, 4  ;;  %s262_s13 = smov 128   ;;  %s189_s0 = int_to_ptr.hbm [resolvable:$true] %s188_s0 }
   0x7   :  { %v61_v8 = vld [vmem:[%s382_s2] sm:$0xff]  ;;  %79 = vmatpush.msra.mxu1 %v62_v6  ;;  %148 = vmatpush.msra.mxu2 %v147_v10  ;;  %v146_v11 = vld [vmem:[%s383_s3 + $0x70] sm:$0xff]  ;;  %v145_v12 = vld [vmem:[%s383_s3 + $0x68] sm:$0xff]  ;;  %24 = vst.msk [vmem:[#allocation2 + $0x8] sm:$0xff] %vm22_vm0, %v260_v32  ;;  %s263_s14 = smov 8  }
   0x8   :  { %53 = vmatpush.msra.mxu0 %v27_v5  ;;  %206 = vmatpush.msra.mxu3 %v147_v10  ;;  %v144_v13 = vld [vmem:[%s383_s3 + $0x60] sm:$0xff]  ;;  %v143_v14 = vld [vmem:[%s383_s3 + $0x58] sm:$0xff]  ;;  %v142_v15 = vld [vmem:[%s383_s3 + $0x50] sm:$0xff] }
   0x9   :  { %200 = vmatmul.msk.f32.vlgmr.msra.gmra.mxu0 %vm22_vm0, %v25_v7  ;;  %80 = vmatpush.msra.mxu1 %v61_v8  ;;  %v141_v16 = vld [vmem:[%s383_s3 + $0x48] sm:$0xff]  ;;  %v140_v17 = vld [vmem:[%s383_s3 + $0x40] sm:$0xff]  ;;  %v139_v18 = vld [vmem:[%s383_s3 + $0x38] sm:$0xff] }
   0xa   :  { %202 = vmatmul.msk.f32.vlgmr.msra.gmra.mxu1 %vm22_vm0, %v25_v7  ;;  %149 = vmatpush.msra.mxu2 %v146_v11  ;;  %v138_v19 = vld [vmem:[%s383_s3 + $0x30] sm:$0xff]  ;;  %v137_v20 = vld [vmem:[%s383_s3 + $0x28] sm:$0xff]  ;;  %v136_v21 = vld [vmem:[%s383_s3 + $0x20] sm:$0xff] }
   0xb   :  { %207 = vmatpush.msra.mxu3 %v146_v11  ;;  %v135_v22 = vld [vmem:[%s383_s3 + $0x18] sm:$0xff]  ;;  %v134_v23 = vld [vmem:[%s383_s3 + $0x10] sm:$0xff]  ;;  %v133_v24 = vld [vmem:[%s383_s3 + $0x8] sm:$0xff] }
   0xc   :  { %150 = vmatpush.msra.mxu2 %v145_v12  ;;  %v132_v25 = vld [vmem:[%s383_s3] sm:$0xff]  ;;  %s261_s3 = smov [#allocation3]  }
   0xd   :  { %208 = vmatpush.msra.mxu3 %v145_v12  ;;  %v130_v61 = vld [vmem:[#allocation2] sm:$0xff]  ;;  %s186_s10 = sshll.u32 %s261_s3, 4  ;;  %s187_s10 = int_to_ptr.vmem [resolvable:$true] %s186_s10 }
   0xe   :  { %151 = vmatpush.msra.mxu2 %v144_v13  ;;  %v131_v0 = vld [vmem:[#allocation2 + $0x8] sm:$0xff] }
   0xf   :  { %209 = vmatpush.msra.mxu3 %v144_v13 }
  0x10   :  { %152 = vmatpush.msra.mxu2 %v143_v14 }
  0x11   :  { %201 = vmatmul.msk.f32.gmra.mxu0 %vm22_vm0, %v26_v9  ;;  %210 = vmatpush.msra.mxu3 %v143_v14 }
  0x12   :  { %203 = vmatmul.msk.f32.gmra.mxu1 %vm22_vm0, %v26_v9  ;;  %153 = vmatpush.msra.mxu2 %v142_v15 }
  0x13   :  { %211 = vmatpush.msra.mxu3 %v142_v15 }
  0x14   :  { %154 = vmatpush.msra.mxu2 %v141_v16 }
  0x15   :  { %212 = vmatpush.msra.mxu3 %v141_v16 }
  0x16   :  { %155 = vmatpush.msra.mxu2 %v140_v17 }
  0x17   :  { %213 = vmatpush.msra.mxu3 %v140_v17 }
  0x18   :  { %156 = vmatpush.msra.mxu2 %v139_v18 }
  0x19   :  { %214 = vmatpush.msra.mxu3 %v139_v18 }
  0x1a   :  { %157 = vmatpush.msra.mxu2 %v138_v19 }
  0x1b   :  { %215 = vmatpush.msra.mxu3 %v138_v19 }
  0x1c   :  { %158 = vmatpush.msra.mxu2 %v137_v20 }
  0x1d   :  { %216 = vmatpush.msra.mxu3 %v137_v20 }
  0x1e   :  { %159 = vmatpush.msra.mxu2 %v136_v21 }
  0x1f   :  { %217 = vmatpush.msra.mxu3 %v136_v21 }
  0x20   :  { %160 = vmatpush.msra.mxu2 %v135_v22 }
  0x21   :  { %218 = vmatpush.msra.mxu3 %v135_v22 }
  0x22   :  { %161 = vmatpush.msra.mxu2 %v134_v23 }
  0x23   :  { %219 = vmatpush.msra.mxu3 %v134_v23 }
  0x24   :  { %162 = vmatpush.msra.mxu2 %v133_v24 }
  0x25   :  { %220 = vmatpush.msra.mxu3 %v133_v24 }
  0x26   :  { %163 = vmatpush.msra.mxu2 %v132_v25 }
  0x27   :  { %221 = vmatpush.msra.mxu3 %v132_v25 }
  0x86   :  { %v55_v26 = vpop.f32.mrf.mxu0 }
  0x87   :  { %v204_v27 = vmul.f32 -1.442695, %v55_v26  ;;  %v82_v44 = vpop.f32.mrf.mxu1 }
  0x89   :  { %226 = vpow2.f32 %v204_v27 }
  0x8e   :  { %v58_v28 = vpop.f32.mrf.mxu0 }
  0x8f   :  { %v227_v29 = vpop.eup %226  ;;  %v205_v30 = vmul.f32 -1.442695, %v58_v28  ;;  %v85_v58 = vpop.f32.mrf.mxu1 }
  0x90   :  { %v94_v31 = vadd.f32 1.0, %v227_v29 }
  0x91   :  { %228 = vpow2.f32 %v205_v30 }
  0x92   :  { %230 = vrcp.f32 %v94_v31  ;;  %v107_v38 = vand.u32 2147483648, %v94_v31  ;;  %v105_v40 = vand.u32 2147483647, %v94_v31  ;;  %vm101_vm2 = vweird.f32 %v94_v31 }
  0x94   :  { %v108_v43 = vor.u32 1.1754944e-38, %v107_v38  ;;  %vm106_vm4 = vcmp.eq.f32.partialorder %v105_v40, 8.507059e+37 }
  0x97   :  { %v229_v33 = vpop.eup %228 }
  0x98   :  { %v231_v34 = vpop.eup %230  ;;  %v95_v35 = vadd.f32 1.0, %v229_v33 }
  0x99   :  { %v97_v36 = vmul.f32 %v231_v34, %v94_v31  ;;  %vm102_vm1 = vweird.f32 %v231_v34 }
  0x9a   :  { %232 = vrcp.f32 %v95_v35  ;;  %vm103_vm3 = vmor %vm101_vm2, %vm102_vm1  ;;  %v122_v50 = vand.u32 2147483648, %v95_v35  ;;  %v120_v52 = vand.u32 2147483647, %v95_v35  ;;  %vm116_vm6 = vweird.f32 %v95_v35 }
  0x9b   :  { %v98_v37 = vsub.f32 1.0, %v97_v36 }
  0x9c   :  { %v123_v55 = vor.u32 1.1754944e-38, %v122_v50  ;;  %vm121_vm8 = vcmp.eq.f32.partialorder %v120_v52, 8.507059e+37 }
  0x9d   :  { %v99_v39 = vmul.f32 %v231_v34, %v98_v37 }
  0x9f   :  { %v100_v41 = vadd.f32 %v231_v34, %v99_v39 }
  0xa0   :  { %v233_v42 = vpop.eup %232 }
  0xa1   :  { %v104_v45 = vsel %vm103_vm3, %v231_v34, %v100_v41  ;;  %v112_v46 = vmul.f32 %v233_v42, %v95_v35  ;;  %vm117_vm5 = vweird.f32 %v233_v42 }
  0xa2   :  { %v109_v47 = vsel %vm106_vm4, %v108_v43, %v104_v45  ;;  %vm118_vm7 = vmor %vm116_vm6, %vm117_vm5 }
  0xa3   :  { %v126_v48 = vmul.f32 %v109_v47, %v55_v26  ;;  %v113_v49 = vsub.f32 1.0, %v112_v46 }
  0xa5   :  { %v114_v51 = vmul.f32 %v233_v42, %v113_v49  ;;  %v128_v53 = vmul.f32 %v126_v48, %v82_v44 }
  0xa7   :  { %v115_v54 = vadd.f32 %v233_v42, %v114_v51  ;;  %164 = vmatmul.f32.vlgmr.msra.gmra.mxu2 %v128_v53 }
  0xa9   :  { %v119_v56 = vsel %vm118_vm7, %v233_v42, %v115_v54 }
  0xaa   :  { %v124_v57 = vsel %vm121_vm8, %v123_v55, %v119_v56 }
  0xab   :  { %v127_v59 = vmul.f32 %v124_v57, %v58_v28 }
  0xad   :  { %v129_v60 = vmul.f32 %v127_v59, %v85_v58 }
  0xaf   :  { %167 = vmatmul.f32.vlgmr.msra.gmra.mxu3 %v129_v60 }
 0x12a   :  { %v165_v62 = vpop.f32.mrf.mxu2 }
 0x12b   :  { %v171_v63 = vadd.f32 %v165_v62, %v130_v61 }
 0x12d   :  { %173 = vst.msk [vmem:[#allocation2] sm:$0xff] %vm22_vm0, %v171_v63 }
 0x132   :  { %v168_v1 = vpop.f32.mrf.mxu3 }
 0x133   :  { %v172_v2 = vadd.f32 %v168_v1, %v131_v0 }
 0x134   :  { %v178_v3 = vld [vmem:[#allocation2] sm:$0xff] }
 0x135   :  { %174 = vst.msk [vmem:[#allocation2 + $0x8] sm:$0xff] %vm22_vm0, %v172_v2 }
 0x136   :  { %180 = vst.msk [vmem:[#allocation3] sm:$0xff] %vm22_vm0, %v178_v3 }
 0x13c   :  { %v179_v4 = vld [vmem:[#allocation2 + $0x8] sm:$0xff] }
 0x13d   :  { %181 = vst.msk [vmem:[#allocation3 + $0x8] sm:$0xff] %vm22_vm0, %v179_v4 }
 0x13e   :  { %194 = dma.vmem_to_hbm [thread:$0]  %s187_s10, 256, %s189_s0, [#allocation4], %s262_s13, %s262_s13, %s263_s14  }
 0x13f   :  { %258 = dma.done.wait [#allocation4], 256  }
 0x140   :  { %259 = vsyncadd [#allocation4], 4294967040 }
 0x141   :  { %199 = vsyncpa [#allocation4], 1 }

</bundles_post_ra>
